<compile_context>
chip_gen: v7x
topology: tpu7x:2x2x1
jax: 0.10.0
libtpu: 0.0.40
codegen_flags: <defaults>
</compile_context>

<pallas_src>
import jax
import jax.numpy as jnp
from jax import lax
from jax.experimental import pallas as pl
from jax.experimental.pallas import tpu as pltpu


def _pick_tile(n, preferred):
    """Largest preferred tile that evenly divides n (fallback: n itself)."""
    for t in preferred:
        if t <= n and n % t == 0:
            return t
    return n


# ---------------------------------------------------------------------------
# Fused kernel: goal projection (once) + gather + state projection + recon
#               + squared-error reduction
# ---------------------------------------------------------------------------
def _factorizer_kernel(inds_ref,                    # SMEM (B,) int32  [scalar prefetch]
                       state_hbm, mat_hbm,          # HBM: (M, Ds) f32, (M, N) f32
                       goal_ref, wg_ref, bg_ref,    # VMEM: (N, Dg) bf16, (Dg, H) bf16, (1, H) f32
                       ws_ref, bs_ref,              # VMEM: (Ds, H) bf16, (1, H) f32
                       sse_ref,                     # SMEM out (1, 1) f32
                       goal_out,                    # VMEM scratch (N, H) bf16 (persists across steps)
                       state_buf, true_buf,         # VMEM scratch (2, tb, Ds) f32, (2, tb, N) f32
                       sem,                         # DMA sems (2, 2): [stream, slot]
                       acc_ref):                    # SMEM scratch (1, 1) f32
    i = pl.program_id(0)
    nsteps = pl.num_programs(0)
    tb = state_buf.shape[1]

    # ---- fused gather: DMA the tb sampled rows of one tile straight from
    #      HBM into VMEM buffer `slot`.
    def issue(tile, slot):
        base = tile * tb

        def _start(r, carry):
            idx = inds_ref[base + r]
            pltpu.make_async_copy(state_hbm.at[pl.ds(idx, 1), :],
                                  state_buf.at[slot, pl.ds(r, 1), :],
                                  sem.at[0, slot]).start()
            pltpu.make_async_copy(mat_hbm.at[pl.ds(idx, 1), :],
                                  true_buf.at[slot, pl.ds(r, 1), :],
                                  sem.at[1, slot]).start()
            return carry

        lax.fori_loop(0, tb, _start, 0)

    @pl.when(i == 0)
    def _init():
        # Prime slot 0 first so the gather DMAs overlap the goal projection.
        issue(0, 0)
        acc_ref[0, 0] = 0.0
        # Hoisted goal projection: computed once, kept resident in VMEM (bf16).
        g = jnp.dot(goal_ref[...], wg_ref[...], preferred_element_type=jnp.float32)
        goal_out[...] = (g + bg_ref[...]).astype(goal_out.dtype)

    slot = lax.rem(i, 2)

    # ---- wait for this tile's 2*tb row copies (one wait per same-sized copy).
    def _wait(r, carry):
        pltpu.make_async_copy(state_hbm.at[pl.ds(0, 1), :],
                              state_buf.at[0, pl.ds(0, 1), :], sem.at[0, slot]).wait()
        pltpu.make_async_copy(mat_hbm.at[pl.ds(0, 1), :],
                              true_buf.at[0, pl.ds(0, 1), :], sem.at[1, slot]).wait()
        return carry

    lax.fori_loop(0, tb, _wait, 0)

    # ---- prefetch the next tile into the other slot; overlaps the compute below.
    @pl.when(i + 1 < nsteps)
    def _prefetch():
        issue(i + 1, 1 - slot)

    # ---- state_model: Linear(Ds -> H), bf16 MXU with f32 accumulation.
    state_out = jnp.dot(state_buf[slot].astype(jnp.bfloat16), ws_ref[...],
                        preferred_element_type=jnp.float32) + bs_ref[...]

    # ---- recon = state_out @ goal_out.T via contraction on the last dims
    #      (no transpose of the (N, H) goal tile is materialized).
    recon = lax.dot_general(state_out.astype(jnp.bfloat16), goal_out[...],
                            (((1,), (1,)), ((), ())),
                            preferred_element_type=jnp.float32)   # (tb, N) f32

    # ---- fused f32 squared-error epilogue, single temporary.
    diff = recon - true_buf[slot]
    acc_ref[0, 0] += jnp.sum(diff * diff)

    @pl.when(i == nsteps - 1)
    def _finalize():
        sse_ref[0, 0] = acc_ref[0, 0]


@jax.jit
def factorizer_forward(inds, state_inp, goal_inp_list, sparse_value_mat,
                       ws, bs, wg, bg):
    """Pallas implementation of ModelFactorizer.forward(inds)."""
    inds = inds.astype(jnp.int32)
    goal_inp = goal_inp_list[0]

    M, Ds = state_inp.shape
    N, Dg = goal_inp.shape
    H = ws.shape[1]
    B = inds.shape[0]

    # bf16 weights/activations for the MXU; accumulation + epilogue stay f32.
    ws_bf = ws.astype(jnp.bfloat16)
    wg_bf = wg.astype(jnp.bfloat16)
    goal_bf = goal_inp.astype(jnp.bfloat16)
    bs2 = bs.reshape(1, H).astype(jnp.float32)
    bg2 = bg.reshape(1, H).astype(jnp.float32)
    state_f32 = state_inp.astype(jnp.float32)
    mat_f32 = sparse_value_mat.astype(jnp.float32)

    tb = _pick_tile(B, (128, 64, 32, 16, 8))
    num_tiles = B // tb

    # VMEM budget: resident blocked inputs (assume double-buffered), the
    # persistent goal_out scratch, the double-buffered gather buffers, temps.
    vmem_bytes = (2 * (N * Dg * 2 + Dg * H * 2 + Ds * H * 2 + 2 * H * 4)
                  + N * H * 2
                  + 2 * tb * (Ds + N) * 4
                  + 4 * tb * max(N, H) * 4)
    vmem_limit = int(min(max(2 * vmem_bytes, 8 << 20), 32 << 20))  # v7x-safe

    grid_spec = pltpu.PrefetchScalarGridSpec(
        num_scalar_prefetch=1,
        grid=(num_tiles,),
        in_specs=[
            pl.BlockSpec(memory_space=pl.ANY),                    # state_inp (HBM)
            pl.BlockSpec(memory_space=pl.ANY),                    # sparse value mat (HBM)
            pl.BlockSpec((N, Dg), lambda i, inds_ref: (0, 0)),    # goal_inp (VMEM resident)
            pl.BlockSpec((Dg, H), lambda i, inds_ref: (0, 0)),    # wg
            pl.BlockSpec((1, H), lambda i, inds_ref: (0, 0)),     # bg
            pl.BlockSpec((Ds, H), lambda i, inds_ref: (0, 0)),    # ws
            pl.BlockSpec((1, H), lambda i, inds_ref: (0, 0)),     # bs
        ],
        out_specs=pl.BlockSpec(memory_space=pltpu.MemorySpace.SMEM),
        scratch_shapes=[
            pltpu.VMEM((N, H), jnp.bfloat16),     # goal_out (persists across steps)
            pltpu.VMEM((2, tb, Ds), jnp.float32),  # double-buffered gathered state rows
            pltpu.VMEM((2, tb, N), jnp.float32),   # double-buffered gathered true rows
            pltpu.SemaphoreType.DMA((2, 2)),       # [stream, slot] gather DMA sems
            pltpu.SMEM((1, 1), jnp.float32),       # running SSE accumulator
        ],
    )

    sse = pl.pallas_call(
        _factorizer_kernel,
        grid_spec=grid_spec,
        out_shape=jax.ShapeDtypeStruct((1, 1), jnp.float32),
        compiler_params=pltpu.CompilerParams(
            dimension_semantics=("arbitrary",),   # serial accumulator + cross-step prefetch
            vmem_limit_bytes=vmem_limit),
        cost_estimate=pl.CostEstimate(
            flops=2 * N * Dg * H + 2 * B * Ds * H + 2 * B * H * N + 3 * B * N,
            transcendentals=0,
            bytes_accessed=(B * (Ds + N) * 4 + N * Dg * 2 + Dg * H * 2
                            + Ds * H * 2 + 2 * H * 4 + 4)),
    )(inds, state_f32, mat_f32, goal_bf, wg_bf, bg2, ws_bf, bs2)

    return sse[0, 0]


if __name__ == "__main__":
    # Lane-dense problem sizes (feature axes are multiples of 128, batch is a
    # multiple of the 128-row tile) -- small but layout-representative.
    M, N = 64, 128        # number of states / goals in the value matrix
    Ds, Dg = 128, 128     # raw state / goal feature dims
    H = 128               # embedding dim produced by the sub-models
    B = 256               # batch of sampled indices (torch default batch_size)

    key = jax.random.PRNGKey(0)
    (k_si, k_gi, k_mat, k_zero, k_ws, k_bs, k_wg, k_bg, k_idx) = jax.random.split(key, 9)

    state_inp = jax.random.normal(k_si, (M, Ds), dtype=jnp.float32)
    goal_inp = [jax.random.normal(k_gi, (N, Dg), dtype=jnp.float32)]
    vals = jax.random.normal(k_mat, (M, N), dtype=jnp.float32)
    keep = jax.random.bernoulli(k_zero, 0.5, (M, N))
    sparse_value_mat = jnp.where(keep, vals, 0.0)

    # sub-model parameters (Linear layers), deterministic init
    ws = jax.random.normal(k_ws, (Ds, H), dtype=jnp.float32) * 0.1
    bs = jax.random.normal(k_bs, (H,), dtype=jnp.float32) * 0.1
    wg = jax.random.normal(k_wg, (Dg, H), dtype=jnp.float32) * 0.1
    bg = jax.random.normal(k_bg, (H,), dtype=jnp.float32) * 0.1

    # sampled indices, same clamping semantics as the torch train loop
    inds = jnp.floor(jax.random.uniform(k_idx, (B,)) * M).astype(jnp.int32)
    inds = jnp.minimum(inds, M - 1)

    # --- run kernel ---------------------------------------------------------
    mse = factorizer_forward(inds, state_inp, goal_inp, sparse_value_mat,
                             ws, bs, wg, bg)
    mse = jax.block_until_ready(mse)

    # --- pure-JAX reference (same bf16-matmul / f32-accumulate recipe) ------
    state_sel = jnp.take(state_inp, inds, axis=0)
    true_sel = jnp.take(sparse_value_mat, inds, axis=0)
    goal_out_ref = (jnp.dot(goal_inp[0].astype(jnp.bfloat16),
                            wg.astype(jnp.bfloat16),
                            preferred_element_type=jnp.float32)
                    + bg).astype(jnp.bfloat16)
    state_out_ref = jnp.dot(state_sel.astype(jnp.bfloat16),
                            ws.astype(jnp.bfloat16),
                            preferred_element_type=jnp.float32) + bs
    recon_ref = jax.lax.dot_general(state_out_ref.astype(jnp.bfloat16), goal_out_ref,
                                    (((1,), (1,)), ((), ())),
                                    preferred_element_type=jnp.float32)
    ref = jnp.sum((recon_ref - true_sel) ** 2)

    assert jnp.allclose(mse, ref, rtol=1e-2, atol=1e-2), (mse, ref)
    print("KERNEL_OK")
</pallas_src>

<mosaic_0001>
module attributes {stable_mosaic.version = 11 : i64} {
  func.func @_factorizer_kernel(%arg0: i32, %arg1: memref<256xi32, #tpu.memory_space<smem>>, %arg2: memref<64x128xf32, #tpu.memory_space<any>>, %arg3: memref<64x128xf32, #tpu.memory_space<any>>, %arg4: memref<128x128xbf16, #tpu.memory_space<vmem>>, %arg5: memref<128x128xbf16, #tpu.memory_space<vmem>>, %arg6: memref<1x128xf32, #tpu.memory_space<vmem>>, %arg7: memref<128x128xbf16, #tpu.memory_space<vmem>>, %arg8: memref<1x128xf32, #tpu.memory_space<vmem>>, %arg9: memref<1x1xf32, #tpu.memory_space<smem>>, %arg10: memref<128x128xbf16, #tpu.memory_space<vmem>>, %arg11: memref<2x128x128xf32, #tpu.memory_space<vmem>>, %arg12: memref<2x128x128xf32, #tpu.memory_space<vmem>>, %arg13: memref<2x2x!tpu.dma_semaphore, #tpu.memory_space<semaphore_mem>>, %arg14: memref<1x1xf32, #tpu.memory_space<smem>>) attributes {dimension_semantics = [#tpu.dimension_semantics<arbitrary>], iteration_bounds = array<i64: 2>, scalar_prefetch = 1 : i64, scratch_operands = 5 : i64, tpu.core_type = #tpu.core_type<tc>, window_params = [{}, {}, {pipeline_mode = #tpu.pipeline_mode<synchronous>, transform_indices = @transform_2, window_bounds = array<i64: 128, 128>}, {pipeline_mode = #tpu.pipeline_mode<synchronous>, transform_indices = @transform_3, window_bounds = array<i64: 128, 128>}, {pipeline_mode = #tpu.pipeline_mode<synchronous>, transform_indices = @transform_4, window_bounds = array<i64: 1, 128>}, {pipeline_mode = #tpu.pipeline_mode<synchronous>, transform_indices = @transform_5, window_bounds = array<i64: 128, 128>}, {pipeline_mode = #tpu.pipeline_mode<synchronous>, transform_indices = @transform_6, window_bounds = array<i64: 1, 128>}, {transform_indices = @transform_7, window_bounds = array<i64: 1, 1>}]} {
    %c0_i32 = arith.constant 0 : i32
    %0 = arith.cmpi eq, %arg0, %c0_i32 : i32
    %1 = arith.extui %0 : i1 to i32
    %c0_i32_0 = arith.constant 0 : i32
    %2 = arith.cmpi ne, %1, %c0_i32_0 : i32
    scf.if %2 {
      %c0_i32_22 = arith.constant 0 : i32
      %c128_i32_23 = arith.constant 128 : i32
      %36 = arith.addi %c0_i32_22, %c128_i32_23 : i32
      %c1_i32_24 = arith.constant 1 : i32
      scf.for %arg15 = %c0_i32_22 to %36 step %c1_i32_24  : i32 {
        %c0_i32_38 = arith.constant 0 : i32
        %46 = arith.addi %c0_i32_38, %arg15 : i32
        %47 = arith.index_cast %46 : i32 to index
        %48 = memref.load %arg1[%47] : memref<256xi32, #tpu.memory_space<smem>>
        %c0_i32_39 = arith.constant 0 : i32
        %c0_i32_40 = arith.constant 0 : i32
        %c0_i32_41 = arith.constant 0 : i32
        %c0_i32_42 = arith.constant 0 : i32
        %49 = tpu.memref_slice %arg2[%48, %c0_i32_42] : memref<64x128xf32, #tpu.memory_space<any>> -> memref<1x128xf32, #tpu.memory_space<any>>
        %c0_i32_43 = arith.constant 0 : i32
        %50 = tpu.memref_slice %arg11[%c0_i32_39, %arg15, %c0_i32_43] : memref<2x128x128xf32, #tpu.memory_space<vmem>> -> memref<1x1x128xf32, #tpu.memory_space<vmem>>
        %51 = tpu.memref_squeeze %50 : memref<1x1x128xf32, #tpu.memory_space<vmem>> -> memref<1x128xf32, #tpu.memory_space<vmem>>
        %52 = tpu.memref_slice %arg13[%c0_i32_40, %c0_i32_41] : memref<2x2x!tpu.dma_semaphore, #tpu.memory_space<semaphore_mem>> -> memref<1x1x!tpu.dma_semaphore, #tpu.memory_space<semaphore_mem>>
        %53 = tpu.memref_squeeze %52 : memref<1x1x!tpu.dma_semaphore, #tpu.memory_space<semaphore_mem>> -> memref<!tpu.dma_semaphore, #tpu.memory_space<semaphore_mem>>
        tpu.enqueue_dma source(%49 : memref<1x128xf32, #tpu.memory_space<any>>) target(%51 : memref<1x128xf32, #tpu.memory_space<vmem>>) target_semaphore(%53 : memref<!tpu.dma_semaphore, #tpu.memory_space<semaphore_mem>>)
        %c0_i32_44 = arith.constant 0 : i32
        %c1_i32_45 = arith.constant 1 : i32
        %c0_i32_46 = arith.constant 0 : i32
        %c0_i32_47 = arith.constant 0 : i32
        %54 = tpu.memref_slice %arg3[%48, %c0_i32_47] : memref<64x128xf32, #tpu.memory_space<any>> -> memref<1x128xf32, #tpu.memory_space<any>>
        %c0_i32_48 = arith.constant 0 : i32
        %55 = tpu.memref_slice %arg12[%c0_i32_44, %arg15, %c0_i32_48] : memref<2x128x128xf32, #tpu.memory_space<vmem>> -> memref<1x1x128xf32, #tpu.memory_space<vmem>>
        %56 = tpu.memref_squeeze %55 : memref<1x1x128xf32, #tpu.memory_space<vmem>> -> memref<1x128xf32, #tpu.memory_space<vmem>>
        %57 = tpu.memref_slice %arg13[%c1_i32_45, %c0_i32_46] : memref<2x2x!tpu.dma_semaphore, #tpu.memory_space<semaphore_mem>> -> memref<1x1x!tpu.dma_semaphore, #tpu.memory_space<semaphore_mem>>
        %58 = tpu.memref_squeeze %57 : memref<1x1x!tpu.dma_semaphore, #tpu.memory_space<semaphore_mem>> -> memref<!tpu.dma_semaphore, #tpu.memory_space<semaphore_mem>>
        tpu.enqueue_dma source(%54 : memref<1x128xf32, #tpu.memory_space<any>>) target(%56 : memref<1x128xf32, #tpu.memory_space<vmem>>) target_semaphore(%58 : memref<!tpu.dma_semaphore, #tpu.memory_space<semaphore_mem>>)
      }
      %c128_i32_25 = arith.constant 128 : i32
      %cst_26 = arith.constant 0.000000e+00 : f32
      %c0_27 = arith.constant 0 : index
      %c0_28 = arith.constant 0 : index
      %37 = memref.load %arg14[%c0_27, %c0_28] : memref<1x1xf32, #tpu.memory_space<smem>>
      memref.store %cst_26, %arg14[%c0_27, %c0_28] : memref<1x1xf32, #tpu.memory_space<smem>>
      %c0_29 = arith.constant 0 : index
      %c0_30 = arith.constant 0 : index
      %38 = vector.load %arg4[%c0_29, %c0_30] : memref<128x128xbf16, #tpu.memory_space<vmem>>, vector<128x128xbf16>
      %c0_31 = arith.constant 0 : index
      %c0_32 = arith.constant 0 : index
      %39 = vector.load %arg5[%c0_31, %c0_32] : memref<128x128xbf16, #tpu.memory_space<vmem>>, vector<128x128xbf16>
      %cst_33 = arith.constant dense<0.000000e+00> : vector<128x128xf32>
      %40 = tpu.matmul %38, %39, %cst_33 {dimension_numbers = #tpu.dot_dimension_numbers<[1], [0], [0], [1], [0, 0, 1, 1], [], []>} : vector<128x128xbf16>, vector<128x128xbf16>, vector<128x128xf32> -> vector<128x128xf32>
      %c0_34 = arith.constant 0 : index
      %c0_35 = arith.constant 0 : index
      %41 = vector.load %arg6[%c0_34, %c0_35] : memref<1x128xf32, #tpu.memory_space<vmem>>, vector<1x128xf32>
      %42 = vector.broadcast %41 : vector<1x128xf32> to vector<128x128xf32>
      %43 = arith.addf %40, %42 : vector<128x128xf32>
      %44 = arith.truncf %43 : vector<128x128xf32> to vector<128x128xbf16>
      %c0_36 = arith.constant 0 : index
      %c0_37 = arith.constant 0 : index
      %45 = vector.load %arg10[%c0_36, %c0_37] : memref<128x128xbf16, #tpu.memory_space<vmem>>, vector<128x128xbf16>
      tpu.vector_store %arg10[%c0_36, %c0_37], %44 {strides = array<i32>} : memref<128x128xbf16, #tpu.memory_space<vmem>>, vector<128x128xbf16>,
    } else {
    }
    %c2_i32 = arith.constant 2 : i32
    %3 = arith.remsi %arg0, %c2_i32 : i32
    %c0_i32_1 = arith.constant 0 : i32
    %c128_i32 = arith.constant 128 : i32
    %4 = arith.addi %c0_i32_1, %c128_i32 : i32
    %c1_i32 = arith.constant 1 : i32
    scf.for %arg15 = %c0_i32_1 to %4 step %c1_i32  : i32 {
      %c0_i32_22 = arith.constant 0 : i32
      %c0_i32_23 = arith.constant 0 : i32
      %c0_i32_24 = arith.constant 0 : i32
      %c0_i32_25 = arith.constant 0 : i32
      %36 = tpu.memref_slice %arg2[%c0_i32_24, %c0_i32_25] : memref<64x128xf32, #tpu.memory_space<any>> -> memref<1x128xf32, #tpu.memory_space<any>>
      %c0_i32_26 = arith.constant 0 : i32
      %c0_i32_27 = arith.constant 0 : i32
      %37 = tpu.memref_slice %arg11[%c0_i32_22, %c0_i32_26, %c0_i32_27] : memref<2x128x128xf32, #tpu.memory_space<vmem>> -> memref<1x1x128xf32, #tpu.memory_space<vmem>>
      %38 = tpu.memref_squeeze %37 : memref<1x1x128xf32, #tpu.memory_space<vmem>> -> memref<1x128xf32, #tpu.memory_space<vmem>>
      %39 = tpu.memref_slice %arg13[%c0_i32_23, %3] : memref<2x2x!tpu.dma_semaphore, #tpu.memory_space<semaphore_mem>> -> memref<1x1x!tpu.dma_semaphore, #tpu.memory_space<semaphore_mem>>
      %40 = tpu.memref_squeeze %39 : memref<1x1x!tpu.dma_semaphore, #tpu.memory_space<semaphore_mem>> -> memref<!tpu.dma_semaphore, #tpu.memory_space<semaphore_mem>>
      tpu.wait_dma2 semaphore(%40 : memref<!tpu.dma_semaphore, #tpu.memory_space<semaphore_mem>>) src(%36 : memref<1x128xf32, #tpu.memory_space<any>>) dst(%38 : memref<1x128xf32, #tpu.memory_space<vmem>>)
      %c0_i32_28 = arith.constant 0 : i32
      %c1_i32_29 = arith.constant 1 : i32
      %c0_i32_30 = arith.constant 0 : i32
      %c0_i32_31 = arith.constant 0 : i32
      %41 = tpu.memref_slice %arg3[%c0_i32_30, %c0_i32_31] : memref<64x128xf32, #tpu.memory_space<any>> -> memref<1x128xf32, #tpu.memory_space<any>>
      %c0_i32_32 = arith.constant 0 : i32
      %c0_i32_33 = arith.constant 0 : i32
      %42 = tpu.memref_slice %arg12[%c0_i32_28, %c0_i32_32, %c0_i32_33] : memref<2x128x128xf32, #tpu.memory_space<vmem>> -> memref<1x1x128xf32, #tpu.memory_space<vmem>>
      %43 = tpu.memref_squeeze %42 : memref<1x1x128xf32, #tpu.memory_space<vmem>> -> memref<1x128xf32, #tpu.memory_space<vmem>>
      %44 = tpu.memref_slice %arg13[%c1_i32_29, %3] : memref<2x2x!tpu.dma_semaphore, #tpu.memory_space<semaphore_mem>> -> memref<1x1x!tpu.dma_semaphore, #tpu.memory_space<semaphore_mem>>
      %45 = tpu.memref_squeeze %44 : memref<1x1x!tpu.dma_semaphore, #tpu.memory_space<semaphore_mem>> -> memref<!tpu.dma_semaphore, #tpu.memory_space<semaphore_mem>>
      tpu.wait_dma2 semaphore(%45 : memref<!tpu.dma_semaphore, #tpu.memory_space<semaphore_mem>>) src(%41 : memref<1x128xf32, #tpu.memory_space<any>>) dst(%43 : memref<1x128xf32, #tpu.memory_space<vmem>>)
    }
    %c1_i32_2 = arith.constant 1 : i32
    %5 = arith.addi %arg0, %c1_i32_2 : i32
    %c2_i32_3 = arith.constant 2 : i32
    %6 = arith.cmpi slt, %5, %c2_i32_3 : i32
    %7 = arith.extui %6 : i1 to i32
    %c0_i32_4 = arith.constant 0 : i32
    %8 = arith.cmpi ne, %7, %c0_i32_4 : i32
    scf.if %8 {
      %c1_i32_22 = arith.constant 1 : i32
      %36 = arith.addi %arg0, %c1_i32_22 : i32
      %c1_i32_23 = arith.constant 1 : i32
      %37 = arith.subi %c1_i32_23, %3 : i32
      %c128_i32_24 = arith.constant 128 : i32
      %38 = arith.muli %36, %c128_i32_24 : i32
      %c0_i32_25 = arith.constant 0 : i32
      %c128_i32_26 = arith.constant 128 : i32
      %39 = arith.addi %c0_i32_25, %c128_i32_26 : i32
      %c1_i32_27 = arith.constant 1 : i32
      scf.for %arg15 = %c0_i32_25 to %39 step %c1_i32_27  : i32 {
        %40 = arith.addi %38, %arg15 : i32
        %41 = arith.index_cast %40 : i32 to index
        %42 = memref.load %arg1[%41] : memref<256xi32, #tpu.memory_space<smem>>
        %c0_i32_29 = arith.constant 0 : i32
        %c0_i32_30 = arith.constant 0 : i32
        %43 = tpu.memref_slice %arg2[%42, %c0_i32_30] : memref<64x128xf32, #tpu.memory_space<any>> -> memref<1x128xf32, #tpu.memory_space<any>>
        %c0_i32_31 = arith.constant 0 : i32
        %44 = tpu.memref_slice %arg11[%37, %arg15, %c0_i32_31] : memref<2x128x128xf32, #tpu.memory_space<vmem>> -> memref<1x1x128xf32, #tpu.memory_space<vmem>>
        %45 = tpu.memref_squeeze %44 : memref<1x1x128xf32, #tpu.memory_space<vmem>> -> memref<1x128xf32, #tpu.memory_space<vmem>>
        %46 = tpu.memref_slice %arg13[%c0_i32_29, %37] : memref<2x2x!tpu.dma_semaphore, #tpu.memory_space<semaphore_mem>> -> memref<1x1x!tpu.dma_semaphore, #tpu.memory_space<semaphore_mem>>
        %47 = tpu.memref_squeeze %46 : memref<1x1x!tpu.dma_semaphore, #tpu.memory_space<semaphore_mem>> -> memref<!tpu.dma_semaphore, #tpu.memory_space<semaphore_mem>>
        tpu.enqueue_dma source(%43 : memref<1x128xf32, #tpu.memory_space<any>>) target(%45 : memref<1x128xf32, #tpu.memory_space<vmem>>) target_semaphore(%47 : memref<!tpu.dma_semaphore, #tpu.memory_space<semaphore_mem>>)
        %c1_i32_32 = arith.constant 1 : i32
        %c0_i32_33 = arith.constant 0 : i32
        %48 = tpu.memref_slice %arg3[%42, %c0_i32_33] : memref<64x128xf32, #tpu.memory_space<any>> -> memref<1x128xf32, #tpu.memory_space<any>>
        %c0_i32_34 = arith.constant 0 : i32
        %49 = tpu.memref_slice %arg12[%37, %arg15, %c0_i32_34] : memref<2x128x128xf32, #tpu.memory_space<vmem>> -> memref<1x1x128xf32, #tpu.memory_space<vmem>>
        %50 = tpu.memref_squeeze %49 : memref<1x1x128xf32, #tpu.memory_space<vmem>> -> memref<1x128xf32, #tpu.memory_space<vmem>>
        %51 = tpu.memref_slice %arg13[%c1_i32_32, %37] : memref<2x2x!tpu.dma_semaphore, #tpu.memory_space<semaphore_mem>> -> memref<1x1x!tpu.dma_semaphore, #tpu.memory_space<semaphore_mem>>
        %52 = tpu.memref_squeeze %51 : memref<1x1x!tpu.dma_semaphore, #tpu.memory_space<semaphore_mem>> -> memref<!tpu.dma_semaphore, #tpu.memory_space<semaphore_mem>>
        tpu.enqueue_dma source(%48 : memref<1x128xf32, #tpu.memory_space<any>>) target(%50 : memref<1x128xf32, #tpu.memory_space<vmem>>) target_semaphore(%52 : memref<!tpu.dma_semaphore, #tpu.memory_space<semaphore_mem>>)
      }
      %c128_i32_28 = arith.constant 128 : i32
    } else {
    }
    %9 = arith.index_cast %3 : i32 to index
    %c0 = arith.constant 0 : index
    %c0_5 = arith.constant 0 : index
    %10 = vector.load %arg11[%9, %c0, %c0_5] : memref<2x128x128xf32, #tpu.memory_space<vmem>>, vector<1x128x128xf32>
    %11 = vector.shape_cast %10 : vector<1x128x128xf32> to vector<128x128xf32>
    %12 = arith.truncf %11 : vector<128x128xf32> to vector<128x128xbf16>
    %c0_6 = arith.constant 0 : index
    %c0_7 = arith.constant 0 : index
    %13 = vector.load %arg7[%c0_6, %c0_7] : memref<128x128xbf16, #tpu.memory_space<vmem>>, vector<128x128xbf16>
    %cst = arith.constant dense<0.000000e+00> : vector<128x128xf32>
    %14 = tpu.matmul %12, %13, %cst {dimension_numbers = #tpu.dot_dimension_numbers<[1], [0], [0], [1], [0, 0, 1, 1], [], []>} : vector<128x128xbf16>, vector<128x128xbf16>, vector<128x128xf32> -> vector<128x128xf32>
    %c0_8 = arith.constant 0 : index
    %c0_9 = arith.constant 0 : index
    %15 = vector.load %arg8[%c0_8, %c0_9] : memref<1x128xf32, #tpu.memory_space<vmem>>, vector<1x128xf32>
    %16 = vector.broadcast %15 : vector<1x128xf32> to vector<128x128xf32>
    %17 = arith.addf %14, %16 : vector<128x128xf32>
    %18 = arith.truncf %17 : vector<128x128xf32> to vector<128x128xbf16>
    %c0_10 = arith.constant 0 : index
    %c0_11 = arith.constant 0 : index
    %19 = vector.load %arg10[%c0_10, %c0_11] : memref<128x128xbf16, #tpu.memory_space<vmem>>, vector<128x128xbf16>
    %cst_12 = arith.constant dense<0.000000e+00> : vector<128x128xf32>
    %20 = tpu.matmul %18, %19, %cst_12 {dimension_numbers = #tpu.dot_dimension_numbers<[1], [1], [0], [0], [0, 0, 1, 0], [], []>} : vector<128x128xbf16>, vector<128x128xbf16>, vector<128x128xf32> -> vector<128x128xf32>
    %21 = arith.index_cast %3 : i32 to index
    %c0_13 = arith.constant 0 : index
    %c0_14 = arith.constant 0 : index
    %22 = vector.load %arg12[%21, %c0_13, %c0_14] : memref<2x128x128xf32, #tpu.memory_space<vmem>>, vector<1x128x128xf32>
    %23 = vector.shape_cast %22 : vector<1x128x128xf32> to vector<128x128xf32>
    %24 = arith.subf %20, %23 : vector<128x128xf32>
    %c0_15 = arith.constant 0 : index
    %c0_16 = arith.constant 0 : index
    %25 = memref.load %arg14[%c0_15, %c0_16] : memref<1x1xf32, #tpu.memory_space<smem>>
    %26 = arith.mulf %24, %24 : vector<128x128xf32>
    %27 = vector.shape_cast %26 : vector<128x128xf32> to vector<1x128x128xf32>
    %cst_17 = arith.constant dense<0.000000e+00> : vector<1xf32>
    %28 = vector.multi_reduction <add>, %27, %cst_17 [1, 2] : vector<1x128x128xf32> to vector<1xf32>
    %29 = vector.shape_cast %28 : vector<1xf32> to vector<1x1x1xf32>
    %30 = vector.extract %29[0, 0, 0] : f32 from vector<1x1x1xf32>
    %31 = arith.addf %25, %30 : f32
    %c0_18 = arith.constant 0 : index
    %c0_19 = arith.constant 0 : index
    %32 = memref.load %arg14[%c0_18, %c0_19] : memref<1x1xf32, #tpu.memory_space<smem>>
    memref.store %31, %arg14[%c0_18, %c0_19] : memref<1x1xf32, #tpu.memory_space<smem>>
    %c1_i32_20 = arith.constant 1 : i32
    %33 = arith.cmpi eq, %arg0, %c1_i32_20 : i32
    %34 = arith.extui %33 : i1 to i32
    %c0_i32_21 = arith.constant 0 : i32
    %35 = arith.cmpi ne, %34, %c0_i32_21 : i32
    scf.if %35 {
      %c0_22 = arith.constant 0 : index
      %c0_23 = arith.constant 0 : index
      %36 = memref.load %arg14[%c0_22, %c0_23] : memref<1x1xf32, #tpu.memory_space<smem>>
      %c0_24 = arith.constant 0 : index
      %c0_25 = arith.constant 0 : index
      %37 = memref.load %arg9[%c0_24, %c0_25] : memref<1x1xf32, #tpu.memory_space<smem>>
      memref.store %36, %arg9[%c0_24, %c0_25] : memref<1x1xf32, #tpu.memory_space<smem>>
    } else {
    }
    return
  }
  func.func @transform_2(%arg0: i32, %arg1: memref<256xi32, #tpu.memory_space<smem>>) -> (i32, i32) {
    %c0_i32 = arith.constant 0 : i32
    %c0_i32_0 = arith.constant 0 : i32
    %c0_i32_1 = arith.constant 0 : i32
    return %c0_i32, %c0_i32_0 : i32, i32
  }
  func.func @transform_3(%arg0: i32, %arg1: memref<256xi32, #tpu.memory_space<smem>>) -> (i32, i32) {
    %c0_i32 = arith.constant 0 : i32
    %c0_i32_0 = arith.constant 0 : i32
    %c0_i32_1 = arith.constant 0 : i32
    return %c0_i32, %c0_i32_0 : i32, i32
  }
  func.func @transform_4(%arg0: i32, %arg1: memref<256xi32, #tpu.memory_space<smem>>) -> (i32, i32) {
    %c0_i32 = arith.constant 0 : i32
    %c0_i32_0 = arith.constant 0 : i32
    %c0_i32_1 = arith.constant 0 : i32
    return %c0_i32, %c0_i32_0 : i32, i32
  }
  func.func @transform_5(%arg0: i32, %arg1: memref<256xi32, #tpu.memory_space<smem>>) -> (i32, i32) {
    %c0_i32 = arith.constant 0 : i32
    %c0_i32_0 = arith.constant 0 : i32
    %c0_i32_1 = arith.constant 0 : i32
    return %c0_i32, %c0_i32_0 : i32, i32
  }
  func.func @transform_6(%arg0: i32, %arg1: memref<256xi32, #tpu.memory_space<smem>>) -> (i32, i32) {
    %c0_i32 = arith.constant 0 : i32
    %c0_i32_0 = arith.constant 0 : i32
    %c0_i32_1 = arith.constant 0 : i32
    return %c0_i32, %c0_i32_0 : i32, i32
  }
  func.func @transform_7(%arg0: i32, %arg1: memref<256xi32, #tpu.memory_space<smem>>) -> (i32, i32) {
    %c0_i32 = arith.constant 0 : i32
    %c0_i32_0 = arith.constant 0 : i32
    %c0_i32_1 = arith.constant 0 : i32
    return %c0_i32, %c0_i32_0 : i32, i32
  }
}

</mosaic_0001>

<bundles_post_ra>
// kernel: factorizer_forward.1
= control target key start
LH: loop header
LB: loop body
LE: loop exit
PB: predicated region body
PF: predicated region fallthrough
CT: control target
= control target key end

     0   :  { %s1785_s0 = inlined_call_operand.vmem [shape: s32[256], index: 0, kind: input, shape index: {}]   ;;  %s1786_s1 = inlined_call_operand.vmem [shape: f32[64,128], index: 1, kind: input, shape index: {}]   ;;  %s1787_s2 = inlined_call_operand.vmem [shape: f32[64,128], index: 2, kind: input, shape index: {}]   ;;  %s1788_s3 = inlined_call_operand.vmem [shape: bf16[128,128], index: 3, kind: input, shape index: {}]   ;;  %s1789_s4 = inlined_call_operand.vmem [shape: bf16[128,128], index: 4, kind: input, shape index: {}]   ;;  %s1790_s5 = inlined_call_operand.vmem [shape: f32[1,128], index: 5, kind: input, shape index: {}]   ;;  %s1791_s6 = inlined_call_operand.vmem [shape: bf16[128,128], index: 6, kind: input, shape index: {}]   ;;  %s1792_s7 = inlined_call_operand.vmem [shape: f32[1,128], index: 7, kind: input, shape index: {}]   ;;  %s1793_s8 = inlined_call_operand.hbm [shape: f32[1,1], index: 8, kind: output, shape index: {}]  }
   0x1   :  { %s13_s29 = sshll.u32 %s1785_s0, 4  ;;  %s14_s29 = int_to_ptr.vmem [resolvable:$true] %s13_s29 }
   0x2   :  { %s1491_s30 = scalar_lea.vmem %s14_s29, 32  ;;  %p1496_p1 = scmp.lt.s32.totalorder %s14_s29, %s14_s29 }
   0x3   :  { %p1492_p0 = scmp.ne.s32.totalorder %s14_s29, %s1491_s30  ;;  %p1497_p2 = scmp.lt.s32.totalorder %s1491_s30, %s1491_s30 }
   0x5   :  { %p1498_p3 = por %p1497_p2, %p1496_p1 }
   0x7   :  { %p1499_p4 = pnand %p1498_p3, %p1492_p0 }
   0x9   :  { %1502 = shalt.err (!%p1499_p4)  }
   0xa   :  { %s1557_s9 = smov [#allocation8]  }
   0xb   :  { %16 = dma.vmem_to_smem %s14_s29, 32, %s1557_s9, [#allocation7] }
   0xc   :  { %1531 = dma.done.wait [#allocation7], 32 }
   0xd   :  { %1532 = vsyncadd [#allocation7], 4294967264 }
   0xe   :  { %18 = sfence }
   0xf   :  { %19 = vsyncpa [#allocation10], 0  ;;  %s1608_s10 = smov 0  }
  0x10 LB: > { %s1614_s0 = sadd.s32 4294967295, %s1543_s10   ;;  %p1217_p5 = scmp.ge.s32.totalorder %s1543_s10, 1  ;;  %s1543_s10 = sphi %s1608_s10, %s25_s10  }
  0x11   : > { %p182_p6 = scmp.lt.s32.totalorder %s1543_s10, 3 }
  0x13   : > { %p183_p7 = pnand %p1217_p5, %p182_p6 }
  0x14   : > { %p1218_p8 = scmp.ne.s32.totalorder (!%p183_p7), %s1614_s0, 0 }
  0x15   : > { %186 = sbr.rel (%p183_p7) target bundleno = 1075 (0x433), region = 40 }
  0x1c   : > { %204 = sbr.rel (%p1218_p8) target bundleno = 310 (0x136), region = 44  ;;  %s1545_s11 = smov (!%p1218_p8), 0  }
  0x23 LB: >> { %s211_s12 = sld [smem:[#allocation8 + %s1547_s11]]  ;;  %s213_s16 = scalar_lea.vmem [#allocation3], %s1547_s11  ;;  %s1547_s11 = sphi %s1545_s11, %s210_s11  }
  0x29   : >> { %s212_s15 = scalar_lea.vmem %s1786_s1, %s211_s12 }
  0x2a   : >> { %v231_v0 = vld [vmem:[%s212_s15] sm:$0x1] }
  0x2b   : >> { %232 = vst [vmem:[%s213_s16] sm:$0x1] %v231_v0 }
  0x2c   : >> { %257 = vsyncadd [#allocation5], 16  ;;  %s258_s19 = scalar_lea.vmem %s1787_s2, %s211_s12  ;;  %s259_s20 = scalar_lea.vmem [#allocation4], %s1547_s11 }
  0x2d   : >> { %v278_v1 = vld [vmem:[%s258_s19] sm:$0x1] }
  0x2e   : >> { %279 = vst [vmem:[%s259_s20] sm:$0x1] %v278_v1 }
  0x2f   : >> { %304 = vsyncadd [#allocation5 + $0x2], 16  ;;  %s210_s11 = sadd.s32 1, %s1547_s11  }
  0x30   : >> { %p207_p9 = scmp.ge.s32.totalorder %s210_s11, 128  }
  0x31   : > { %v1467_v2 = vld [vmem:[%s1789_s4] sm:$0xff] (%p207_p9)   ;;  %s1558_s23 = smov (%p207_p9), 0.0   ;;  %v1468_v3 = vld [vmem:[%s1789_s4 + $0x8] sm:$0xff] (%p207_p9)   ;;  %v1469_v4 = vld [vmem:[%s1789_s4 + $0x10] sm:$0xff] (%p207_p9)  }
  0x32   : > { %209 = sbr.rel (!%p207_p9) target bundleno = 35 (0x23), region = 278  ;;  %306 = sst [smem:[#allocation6]] (%p207_p9), %s1558_s23  ;;  %1309 = vmatprep.subr.bf16.mxu0 (%p207_p9), %v1467_v2  ;;  %1405 = vmatprep.subr.bf16.mxu1 (%p207_p9), %v1467_v2  ;;  %v1470_v5 = vld [vmem:[%s1789_s4 + $0x18] sm:$0xff] (%p207_p9)   ;;  %v1475_v6 = vld [vmem:[%s1788_s3] sm:$0xff] (%p207_p9)   ;;  %v1472_v9 = vld [vmem:[%s1789_s4 + $0x28] sm:$0xff] (%p207_p9)  }
  0x33   : > { %1310 = vmatpush3.bf16.msra.mxu0 (%p207_p9), %v1467_v2  ;;  %1413 = vmatpush3.bf16.msra.mxu1 (%p207_p9), %v1467_v2  ;;  %v1476_v7 = vld [vmem:[%s1788_s3 + $0x20] sm:$0xff] (%p207_p9)   ;;  %v1473_v10 = vld [vmem:[%s1789_s4 + $0x30] sm:$0xff] (%p207_p9)   ;;  %v1474_v11 = vld [vmem:[%s1789_s4 + $0x38] sm:$0xff] (%p207_p9)  }
  0x34   : > { %1311 = vmatprep.subr.bf16.mxu0 (%p207_p9), %v1468_v3  ;;  %1406 = vmatprep.subr.bf16.mxu1 (%p207_p9), %v1468_v3  ;;  %v1471_v8 = vld [vmem:[%s1789_s4 + $0x20] sm:$0xff] (%p207_p9)   ;;  %v1477_v12 = vld [vmem:[%s1788_s3 + $0x8] sm:$0xff] (%p207_p9)   ;;  %v1479_v14 = vld [vmem:[%s1788_s3 + $0x10] sm:$0xff] (%p207_p9)  }
  0x35   : > { %1325 = vmatprep.mubr.bf16.mxu0 (%p207_p9), %v1475_v6  ;;  %1333 = vmatprep.mubr.bf16.mxu1 (%p207_p9), %v1476_v7  ;;  %v1478_v13 = vld [vmem:[%s1788_s3 + $0x28] sm:$0xff] (%p207_p9)   ;;  %v1480_v15 = vld [vmem:[%s1788_s3 + $0x30] sm:$0xff] (%p207_p9)   ;;  %v1481_v16 = vld [vmem:[%s1788_s3 + $0x18] sm:$0xff] (%p207_p9)  }
  0x36   : > { %v1482_v17 = vld [vmem:[%s1788_s3 + $0x38] sm:$0xff] (%p207_p9)   ;;  %v1219_v19 = vld [vmem:[%s1790_s5] ss:$0 sm:$0xff] (%p207_p9) }
  0x37   : > { %1312 = vmatpush3.bf16.msra.mxu0 (%p207_p9), %v1468_v3  ;;  %1414 = vmatpush3.bf16.msra.mxu1 (%p207_p9), %v1468_v3 }
  0x38   : > { %1313 = vmatprep.subr.bf16.mxu0 (%p207_p9), %v1469_v4  ;;  %1407 = vmatprep.subr.bf16.mxu1 (%p207_p9), %v1469_v4 }
  0x3b   : > { %1314 = vmatpush3.bf16.msra.mxu0 %v1469_v4  ;;  %1415 = vmatpush3.bf16.msra.mxu1 %v1469_v4 }
  0x3c   : > { %1315 = vmatprep.subr.bf16.mxu0 %v1470_v5  ;;  %1408 = vmatprep.subr.bf16.mxu1 %v1470_v5 }
  0x3f   : > { %1316 = vmatpush3.bf16.msra.mxu0 %v1470_v5  ;;  %1416 = vmatpush3.bf16.msra.mxu1 %v1470_v5 }
  0x40   : > { %1317 = vmatprep.subr.bf16.mxu0 %v1471_v8  ;;  %1409 = vmatprep.subr.bf16.mxu1 %v1471_v8 }
  0x43   : > { %1318 = vmatpush3.bf16.msra.mxu0 %v1471_v8  ;;  %1417 = vmatpush3.bf16.msra.mxu1 %v1471_v8 }
  0x44   : > { %1319 = vmatprep.subr.bf16.mxu0 %v1472_v9  ;;  %1410 = vmatprep.subr.bf16.mxu1 %v1472_v9 }
  0x47   : > { %1320 = vmatpush3.bf16.msra.mxu0 %v1472_v9  ;;  %1418 = vmatpush3.bf16.msra.mxu1 %v1472_v9 }
  0x48   : > { %1321 = vmatprep.subr.bf16.mxu0 %v1473_v10  ;;  %1411 = vmatprep.subr.bf16.mxu1 %v1473_v10 }
  0x4b   : > { %1322 = vmatpush3.bf16.msra.mxu0 %v1473_v10  ;;  %1419 = vmatpush3.bf16.msra.mxu1 %v1473_v10 }
  0x4c   : > { %1323 = vmatprep.subr.bf16.mxu0 %v1474_v11  ;;  %1412 = vmatprep.subr.bf16.mxu1 %v1474_v11 }
  0x4f   : > { %1324 = vmatpush3.bf16.msra.mxu0 %v1474_v11  ;;  %1420 = vmatpush3.bf16.msra.mxu1 %v1474_v11 }
  0x52   : > { %1326 = vmatmul.mubr.bf16.vlgmr.msra.gmra.mrb[0].mxu0 %v1477_v12  ;;  %1334 = vmatmul.mubr.bf16.vlgmr.msra.gmra.mrb[0].mxu1 %v1478_v13 }
  0x53   : > { %1329 = vmatprep.mubr.bf16.mxu0 %v1479_v14  ;;  %1337 = vmatprep.mubr.bf16.mxu1 %v1480_v15 }
  0x5a   : > { %1330 = vmatmul.mubr.bf16.gmra.mrb[4].mxu0 %v1481_v16  ;;  %1338 = vmatmul.mubr.bf16.gmra.mrb[4].mxu1 %v1482_v17 }
 0x125   : > { %v1327_v18 = vpop.f32.mrb[0].mxu0  ;;  %v1335_v20 = vpop.f32.mrb[0].mxu1 }
 0x126   : > { %v476_v21 = vpop.f32.mrb[1].mxu0  ;;  %v508_v22 = vpop.f32.mrb[1].mxu1  ;;  %v485_v25 = vadd.f32 %v1327_v18, %v1219_v19  ;;  %v517_v26 = vadd.f32 %v1335_v20, %v1219_v19 }
 0x127   : > { %v1328_v23 = vpop.f32.mrb[2].mxu0  ;;  %v1336_v24 = vpop.f32.mrb[2].mxu1  ;;  %v477_v31 = vadd.f32 %v1219_v19, %v476_v21  ;;  %v509_v32 = vadd.f32 %v1219_v19, %v508_v22 }
 0x128   : > { %v488_v27 = vadd.f32 %v1328_v23, %v1219_v19  ;;  %v520_v28 = vadd.f32 %v1336_v24, %v1219_v19  ;;  %v479_v29 = vpop.f32.mrb[3].mxu0  ;;  %v511_v30 = vpop.f32.mrb[3].mxu1 }
 0x129   : > { %v480_v33 = vadd.f32 %v1219_v19, %v479_v29  ;;  %v512_v34 = vadd.f32 %v1219_v19, %v511_v30 }
 0x12a   : > { %v540_v35 = vpack.c.bf16 %v488_v27, %v485_v25  ;;  %v544_v36 = vpack.c.bf16 %v520_v28, %v517_v26 }
 0x12b   : > { %v539_v37 = vpack.c.bf16 %v480_v33, %v477_v31  ;;  %v543_v38 = vpack.c.bf16 %v512_v34, %v509_v32 }
 0x12c   : > { %548 = vst [vmem:[#allocation2 + $0x8] sm:$0xff] %v540_v35  ;;  %552 = vst [vmem:[#allocation2 + $0x28] sm:$0xff] %v544_v36 }
 0x12d   : > { %547 = vst [vmem:[#allocation2] sm:$0xff] %v539_v37  ;;  %551 = vst [vmem:[#allocation2 + $0x20] sm:$0xff] %v543_v38  ;;  %v1331_v39 = vpop.f32.mrb[4].mxu0  ;;  %v1339_v40 = vpop.f32.mrb[4].mxu1 }
 0x12e   : > { %v492_v41 = vpop.f32.mrb[5].mxu0  ;;  %v524_v42 = vpop.f32.mrb[5].mxu1  ;;  %v501_v45 = vadd.f32 %v1331_v39, %v1219_v19  ;;  %v533_v46 = vadd.f32 %v1339_v40, %v1219_v19 }
 0x12f   : > { %v1332_v43 = vpop.f32.mrb[6].mxu0  ;;  %v1340_v44 = vpop.f32.mrb[6].mxu1  ;;  %v493_v51 = vadd.f32 %v1219_v19, %v492_v41  ;;  %v525_v52 = vadd.f32 %v1219_v19, %v524_v42 }
 0x130   : > { %v504_v47 = vadd.f32 %v1332_v43, %v1219_v19  ;;  %v536_v48 = vadd.f32 %v1340_v44, %v1219_v19  ;;  %v495_v49 = vpop.f32.mrb[7].mxu0  ;;  %v527_v50 = vpop.f32.mrb[7].mxu1 }
 0x131   : > { %v496_v53 = vadd.f32 %v1219_v19, %v495_v49  ;;  %v528_v54 = vadd.f32 %v1219_v19, %v527_v50 }
 0x132   : > { %v542_v55 = vpack.c.bf16 %v504_v47, %v501_v45  ;;  %v546_v56 = vpack.c.bf16 %v536_v48, %v533_v46 }
 0x133   : > { %v541_v57 = vpack.c.bf16 %v496_v53, %v493_v51  ;;  %v545_v58 = vpack.c.bf16 %v528_v54, %v525_v52 }
 0x134   : > { %550 = vst [vmem:[#allocation2 + $0x18] sm:$0xff] %v542_v55  ;;  %554 = vst [vmem:[#allocation2 + $0x38] sm:$0xff] %v546_v56 }
 0x135   : > { %549 = vst [vmem:[#allocation2 + $0x10] sm:$0xff] %v541_v57  ;;  %553 = vst [vmem:[#allocation2 + $0x30] sm:$0xff] %v545_v58 }
 0x136 PF: > { %p555_p10 = scmp.lt.s32.totalorder %s1614_s0, 0  ;;  %s556_s14 = ssub.s32 0, %s1614_s0 }
 0x137   : > { %s1236_s15 = smin.u32 %s1614_s0, %s556_s14  ;;  %s1549_s18 = smov 0  }
 0x138   : > { %s558_s16 = sand.u32 1, %s1236_s15  }
 0x139   : > { %s559_s17 = ssub.s32 0, %s558_s16 }
 0x13a   : > { %s1795_s17 = smov (!%p555_p10, %s559_s17), %s558_s16 }
 0x13b LB: >> { %s567_s19 = scalar_lea.sflag [#allocation5], %s1795_s17  ;;  %s1551_s18 = sphi %s1549_s18, %s566_s18  }
 0x13c   : >> { %1533 = dma.done.wait %s567_s19, 16 }
 0x13d   : >> { %1534 = vsyncadd %s567_s19, 4294967280  ;;  %s1137_s20 = scalar_lea.sflag %s567_s19, 2 [#allocation5] }
 0x13e   : >> { %1535 = dma.done.wait %s1137_s20, 16 }
 0x13f   : >> { %1536 = vsyncadd %s1137_s20, 4294967280  ;;  %s566_s18 = sadd.s32 1, %s1551_s18  }
 0x140   : >> { %p563_p11 = scmp.ge.s32.totalorder %s566_s18, 128  }
 0x141   : > { %s575_s21 = sadd.s32 (%p563_p11), 1, %s1614_s0 }
 0x142   : > { %565 = sbr.rel (!%p563_p11) target bundleno = 315 (0x13b), region = 289  ;;  %p1237_p12 = scmp.ge.s32.totalorder (%p563_p11), %s575_s21, 2 }
 0x149   : > { %579 = sbr.rel (%p1237_p12) target bundleno = 359 (0x167), region = 122  ;;  %s580_s22 = ssub.s32 (!%p1237_p12), 1, %s1795_s17 }
 0x14a   : > { %s1259_s23 = sshll.u32 (!%p1237_p12), %s1614_s0, 7  ;;  %s1553_s25 = smov (!%p1237_p12), 0  }
 0x14b   : > { %s1260_s24 = sadd.s32 (!%p1237_p12), 128, %s1259_s23 }
 0x150 LB: >> { %s588_s26 = sadd.s32 %s1555_s25, %s1260_s24  ;;  %s1239_s27 = sshll.u32 %s580_s22, 7  ;;  %s1555_s25 = sphi %s1553_s25, %s587_s25  }
 0x151   : >> { %s589_s28 = sld [smem:[#allocation8 + %s588_s26]]  ;;  %s592_s29 = sadd.s32 %s1555_s25, %s1239_s27 }
 0x152   : >> { %s593_s12 = scalar_lea.vmem [#allocation3], %s592_s29  ;;  %s594_s13 = scalar_lea.sflag [#allocation5], %s580_s22 }
 0x157   : >> { %s590_s11 = scalar_lea.vmem %s1786_s1, %s589_s28 }
 0x158   : >> { %v612_v59 = vld [vmem:[%s590_s11] sm:$0x1] }
 0x159   : >> { %613 = vst [vmem:[%s593_s12] sm:$0x1] %v612_v59 }
 0x15a   : >> { %638 = vsyncadd %s594_s13, 16  ;;  %s639_s16 = scalar_lea.vmem %s1787_s2, %s589_s28  ;;  %s1150_s18 = scalar_lea.sflag %s594_s13, 2 [#allocation5] }
 0x15b   : >> { %v660_v60 = vld [vmem:[%s639_s16] sm:$0x1]  ;;  %s640_s19 = scalar_lea.vmem [#allocation4], %s592_s29 }
 0x15c   : >> { %661 = vst [vmem:[%s640_s19] sm:$0x1] %v660_v60 }
 0x15d   : >> { %686 = vsyncadd %s1150_s18, 16  ;;  %s587_s25 = sadd.s32 1, %s1555_s25  }
 0x15e   : >> { %p584_p13 = scmp.ge.s32.totalorder %s587_s25, 128  }
 0x160   : > { %586 = sbr.rel (!%p584_p13) target bundleno = 336 (0x150), region = 300 }
 0x167 PF: > { %v1483_v61 = vld [vmem:[%s1791_s6] sm:$0xff]   ;;  %v1484_v62 = vld [vmem:[%s1791_s6 + $0x8] sm:$0xff]   ;;  %s1240_s27 = sshll.u32 %s1795_s17, 7  ;;  %v1485_v63 = vld [vmem:[%s1791_s6 + $0x10] sm:$0xff]   ;;  %s1027_s17 = sld [smem:[#allocation6]] }
 0x168   : > { %1341 = vmatprep.subr.bf16.mxu0 %v1483_v61  ;;  %v1486_v0 = vld [vmem:[%s1791_s6 + $0x18] sm:$0xff]   ;;  %s1706_s25 = scalar_lea.vmem [#allocation3], %s1240_s27  ;;  %v1487_v4 = vld [vmem:[%s1791_s6 + $0x20] sm:$0xff]   ;;  %v890_v6 = vld [vmem:[#allocation2 + $0x8] sm:$0xff]  ;;  %s1741_s20 = scalar_lea.vmem [#allocation4], %s1240_s27 }
 0x169   : > { %1342 = vmatpush3.bf16.msra.mxu0 %v1483_v61  ;;  %v689_v1 = vld [vmem:[%s1706_s25] sm:$0xff]  ;;  %v690_v2 = vld [vmem:[%s1706_s25 + $0x8] sm:$0xff]  ;;  %v1489_v8 = vld [vmem:[%s1791_s6 + $0x30] sm:$0xff]   ;;  %p1429_p0 = scmp.eq.s32.totalorder %s1614_s0, 1  ;;  %s1503_s28 = scalar_lea.hbm %s1793_s8, 16 }
 0x16a   : > { %1343 = vmatprep.subr.bf16.mxu0 %v1484_v62  ;;  %v705_v3 = vpack.c.bf16 %v690_v2, %v689_v1  ;;  %v889_v5 = vld [vmem:[#allocation2] sm:$0xff]  ;;  %v1488_v7 = vld [vmem:[%s1791_s6 + $0x28] sm:$0xff]   ;;  %v891_v9 = vld [vmem:[#allocation2 + $0x10] sm:$0xff]  ;;  %p1504_p1 = scmp.ne.s32.totalorder %s1793_s8, %s1503_s28  ;;  %p1509_p4 = scmp.lt.u32.totalorder %s1503_s28, %s1793_s8 }
 0x16b   : > { %1373 = vmatprep.subr.bf16.mxu1 %v889_v5  ;;  %v1490_v10 = vld [vmem:[%s1791_s6 + $0x38] sm:$0xff]   ;;  %v691_v11 = vld [vmem:[%s1706_s25 + $0x10] sm:$0xff]  ;;  %v693_v13 = vld [vmem:[%s1706_s25 + $0x20] sm:$0xff] }
 0x16c   : > { %1357 = vmatprep.mubr.bf16.mxu0 %v705_v3  ;;  %1374 = vmatpush3.bf16.xpose.msra.mxu1 %v889_v5  ;;  %v692_v12 = vld [vmem:[%s1706_s25 + $0x18] sm:$0xff]  ;;  %v694_v14 = vld [vmem:[%s1706_s25 + $0x28] sm:$0xff]  ;;  %v695_v18 = vld [vmem:[%s1706_s25 + $0x30] sm:$0xff]  ;;  %p1505_p2 = pnand %p1504_p1, %p1429_p0 }
 0x16d   : > { %1344 = vmatpush3.bf16.msra.mxu0 %v1484_v62  ;;  %1375 = vmatprep.subr.bf16.mxu1 %v890_v6  ;;  %v892_v15 = vld [vmem:[#allocation2 + $0x18] sm:$0xff]  ;;  %v706_v16 = vpack.c.bf16 %v692_v12, %v691_v11  ;;  %v707_v17 = vpack.c.bf16 %v694_v14, %v693_v13  ;;  %v697_v20 = vld [vmem:[%s1706_s25 + $0x40] sm:$0xff]  ;;  %v698_v21 = vld [vmem:[%s1706_s25 + $0x48] sm:$0xff] }
 0x16e   : > { %1345 = vmatprep.subr.bf16.mxu0 %v1485_v63  ;;  %v696_v19 = vld [vmem:[%s1706_s25 + $0x38] sm:$0xff]  ;;  %v893_v22 = vld [vmem:[#allocation2 + $0x20] sm:$0xff]  ;;  %v709_v24 = vpack.c.bf16 %v698_v21, %v697_v20  ;;  %v699_v25 = vld [vmem:[%s1706_s25 + $0x50] sm:$0xff]  ;;  %p1506_p3 = pneg %p1505_p2 }
 0x16f   : > { %v708_v23 = vpack.c.bf16 %v696_v19, %v695_v18  ;;  %v700_v26 = vld [vmem:[%s1706_s25 + $0x58] sm:$0xff]  ;;  %v701_v27 = vld [vmem:[%s1706_s25 + $0x60] sm:$0xff]  ;;  %v702_v28 = vld [vmem:[%s1706_s25 + $0x68] sm:$0xff] }
 0x170   : > { %v894_v29 = vld [vmem:[#allocation2 + $0x28] sm:$0xff]  ;;  %v710_v30 = vpack.c.bf16 %v700_v26, %v699_v25  ;;  %v711_v31 = vpack.c.bf16 %v702_v28, %v701_v27  ;;  %v703_v32 = vld [vmem:[%s1706_s25 + $0x70] sm:$0xff]  ;;  %v704_v33 = vld [vmem:[%s1706_s25 + $0x78] sm:$0xff]  ;;  %p1511_p5 = pnand %p1509_p4, %p1506_p3 }
 0x171   : > { %1346 = vmatpush3.bf16.msra.mxu0 %v1485_v63  ;;  %v895_v34 = vld [vmem:[#allocation2 + $0x30] sm:$0xff]  ;;  %v712_v35 = vpack.c.bf16 %v704_v33, %v703_v32  ;;  %v896_v36 = vld [vmem:[#allocation2 + $0x38] sm:$0xff]  ;;  %v1241_v38 = vld [vmem:[%s1792_s7] ss:$0 sm:$0xff] }
 0x172   : > { %1347 = vmatprep.subr.bf16.mxu0 %v1486_v0  ;;  %v995_v14 = vld [vmem:[%s1741_s20] sm:$0xff]  ;;  %v996_v18 = vld [vmem:[%s1741_s20 + $0x8] sm:$0xff]  ;;  %v998_v21 = vld [vmem:[%s1741_s20 + $0x18] sm:$0xff] }
 0x173   : > { %v999_v28 = vld [vmem:[%s1741_s20 + $0x20] sm:$0xff]  ;;  %v1001_v32 = vld [vmem:[%s1741_s20 + $0x30] sm:$0xff] }
 0x174   : > { %1376 = vmatpush3.bf16.xpose.msra.mxu1 %v890_v6 }
 0x175   : > { %1348 = vmatpush3.bf16.msra.mxu0 %v1486_v0  ;;  %1377 = vmatprep.subr.bf16.mxu1 %v891_v9 }
 0x176   : > { %1349 = vmatprep.subr.bf16.mxu0 %v1487_v4 }
 0x179   : > { %1350 = vmatpush3.bf16.msra.mxu0 %v1487_v4 }
 0x17a   : > { %1351 = vmatprep.subr.bf16.mxu0 %v1488_v7 }
 0x17c   : > { %1378 = vmatpush3.bf16.xpose.msra.mxu1 %v891_v9 }
 0x17d   : > { %1352 = vmatpush3.bf16.msra.mxu0 %v1488_v7  ;;  %1379 = vmatprep.subr.bf16.mxu1 %v892_v15 }
 0x17e   : > { %1353 = vmatprep.subr.bf16.mxu0 %v1489_v8 }
 0x181   : > { %1354 = vmatpush3.bf16.msra.mxu0 %v1489_v8 }
 0x182   : > { %1355 = vmatprep.subr.bf16.mxu0 %v1490_v10 }
 0x184   : > { %1380 = vmatpush3.bf16.xpose.msra.mxu1 %v892_v15 }
 0x185   : > { %1356 = vmatpush3.bf16.msra.mxu0 %v1490_v10  ;;  %1381 = vmatprep.subr.bf16.mxu1 %v893_v22 }
 0x188   : > { %1358 = vmatmul.mubr.bf16.vlgmr.msra.gmra.mrb[0].mxu0 %v706_v16  ;;  %v997_v16 = vld [vmem:[%s1741_s20 + $0x10] sm:$0xff] }
 0x189   : > { %1361 = vmatprep.mubr.bf16.mxu0 %v707_v17 }
 0x18c   : > { %1382 = vmatpush3.bf16.xpose.msra.mxu1 %v893_v22 }
 0x18d   : > { %1383 = vmatprep.subr.bf16.mxu1 %v894_v29 }
 0x190   : > { %1362 = vmatmul.mubr.bf16.gmra.mrb[4].mxu0 %v708_v23 }
 0x191   : > { %1365 = vmatprep.mubr.bf16.mxu0 %v709_v24 }
 0x194   : > { %1384 = vmatpush3.bf16.xpose.msra.mxu1 %v894_v29 }
 0x195   : > { %1385 = vmatprep.subr.bf16.mxu1 %v895_v34 }
 0x198   : > { %1366 = vmatmul.mubr.bf16.gmra.mrb[8].mxu0 %v710_v30 }
 0x199   : > { %1369 = vmatprep.mubr.bf16.mxu0 %v711_v31 }
 0x19c   : > { %1386 = vmatpush3.bf16.xpose.msra.mxu1 %v895_v34  ;;  %v1000_v34 = vld [vmem:[%s1741_s20 + $0x28] sm:$0xff] }
 0x19d   : > { %1387 = vmatprep.subr.bf16.mxu1 %v896_v36 }
 0x1a0   : > { %1370 = vmatmul.mubr.bf16.gmra.mrb[12].mxu0 %v712_v35 }
 0x1a4   : > { %1388 = vmatpush3.bf16.xpose.msra.mxu1 %v896_v36 }
 0x25b   : > { %v1359_v37 = vpop.f32.mrb[0].mxu0 }
 0x25c   : > { %v818_v39 = vpop.f32.mrb[1].mxu0  ;;  %v827_v41 = vadd.f32 %v1359_v37, %v1241_v38 }
 0x25d   : > { %v1360_v40 = vpop.f32.mrb[2].mxu0  ;;  %v819_v44 = vadd.f32 %v1241_v38, %v818_v39  ;;  %v1002_v39 = vld [vmem:[%s1741_s20 + $0x38] sm:$0xff] }
 0x25e   : > { %v830_v42 = vadd.f32 %v1360_v40, %v1241_v38  ;;  %v821_v43 = vpop.f32.mrb[3].mxu0 }
 0x25f   : > { %v822_v45 = vadd.f32 %v1241_v38, %v821_v43 }
 0x260   : > { %v882_v46 = vpack.c.bf16 %v830_v42, %v827_v41 }
 0x261   : > { %v881_v47 = vpack.c.bf16 %v822_v45, %v819_v44 }
 0x263   : > { %v1363_v48 = vpop.f32.mrb[4].mxu0  ;;  %1389 = vmatprep.mubr.bf16.mxu1 %v881_v47 }
 0x264   : > { %v834_v49 = vpop.f32.mrb[5].mxu0  ;;  %1390 = vmatmul.mubr.bf16.vlgmr.msra.gmra.mrb[0].mxu1 %v882_v46  ;;  %v843_v51 = vadd.f32 %v1363_v48, %v1241_v38  ;;  %v1003_v48 = vld [vmem:[%s1741_s20 + $0x40] sm:$0xff] }
 0x265   : > { %v1364_v50 = vpop.f32.mrb[6].mxu0  ;;  %v835_v54 = vadd.f32 %v1241_v38, %v834_v49 }
 0x266   : > { %v846_v52 = vadd.f32 %v1364_v50, %v1241_v38  ;;  %v837_v53 = vpop.f32.mrb[7].mxu0 }
 0x267   : > { %v838_v55 = vadd.f32 %v1241_v38, %v837_v53 }
 0x268   : > { %v884_v56 = vpack.c.bf16 %v846_v52, %v843_v51  ;;  %v1005_v52 = vld [vmem:[%s1741_s20 + $0x50] sm:$0xff] }
 0x269   : > { %v883_v57 = vpack.c.bf16 %v838_v55, %v835_v54  ;;  %v1004_v54 = vld [vmem:[%s1741_s20 + $0x48] sm:$0xff] }
 0x26b   : > { %v1367_v58 = vpop.f32.mrb[8].mxu0  ;;  %1393 = vmatprep.mubr.bf16.mxu1 %v883_v57 }
 0x26c   : > { %v850_v59 = vpop.f32.mrb[9].mxu0  ;;  %1394 = vmatmul.mubr.bf16.gmra.mrb[4].mxu1 %v884_v56  ;;  %v859_v61 = vadd.f32 %v1367_v58, %v1241_v38 }
 0x26d   : > { %v1368_v60 = vpop.f32.mrb[10].mxu0  ;;  %v851_v0 = vadd.f32 %v1241_v38, %v850_v59  ;;  %v1006_v59 = vld [vmem:[%s1741_s20 + $0x58] sm:$0xff] }
 0x26e   : > { %v862_v62 = vadd.f32 %v1368_v60, %v1241_v38  ;;  %v853_v63 = vpop.f32.mrb[11].mxu0 }
 0x26f   : > { %v854_v1 = vadd.f32 %v1241_v38, %v853_v63 }
 0x270   : > { %v886_v2 = vpack.c.bf16 %v862_v62, %v859_v61 }
 0x271   : > { %v885_v3 = vpack.c.bf16 %v854_v1, %v851_v0 }
 0x273   : > { %v1371_v4 = vpop.f32.mrb[12].mxu0  ;;  %1397 = vmatprep.mubr.bf16.mxu1 %v885_v3 }
 0x274   : > { %v866_v5 = vpop.f32.mrb[13].mxu0  ;;  %1398 = vmatmul.mubr.bf16.gmra.mrb[8].mxu1 %v886_v2  ;;  %v875_v7 = vadd.f32 %v1371_v4, %v1241_v38  ;;  %v1007_v4 = vld [vmem:[%s1741_s20 + $0x60] sm:$0xff] }
 0x275   : > { %v1372_v6 = vpop.f32.mrb[14].mxu0  ;;  %v867_v10 = vadd.f32 %v1241_v38, %v866_v5 }
 0x276   : > { %v878_v8 = vadd.f32 %v1372_v6, %v1241_v38  ;;  %v869_v9 = vpop.f32.mrb[15].mxu0 }
 0x277   : > { %v870_v11 = vadd.f32 %v1241_v38, %v869_v9 }
 0x278   : > { %v888_v12 = vpack.c.bf16 %v878_v8, %v875_v7  ;;  %v1009_v8 = vld [vmem:[%s1741_s20 + $0x70] sm:$0xff] }
 0x279   : > { %v887_v13 = vpack.c.bf16 %v870_v11, %v867_v10  ;;  %v1008_v10 = vld [vmem:[%s1741_s20 + $0x68] sm:$0xff] }
 0x27b   : > { %1401 = vmatprep.mubr.bf16.mxu1 %v887_v13 }
 0x27c   : > { %1402 = vmatmul.mubr.bf16.gmra.mrb[12].mxu1 %v888_v12 }
 0x337   : > { %v1391_v15 = vpop.f32.mrb[0].mxu1 }
 0x338   : > { %v931_v17 = vpop.f32.mrb[1].mxu1  ;;  %v1013_v23 = vsub.f32 %v1391_v15, %v997_v16  ;;  %v1010_v15 = vld [vmem:[%s1741_s20 + $0x78] sm:$0xff] }
 0x339   : > { %v1011_v19 = vsub.f32 %v931_v17, %v995_v14  ;;  %v1392_v20 = vpop.f32.mrb[2].mxu1 }
 0x33a   : > { %v934_v22 = vpop.f32.mrb[3].mxu1  ;;  %v1014_v26 = vsub.f32 %v1392_v20, %v998_v21  ;;  %v1030_v29 = vmul.f32 %v1013_v23, %v1013_v23 }
 0x33b   : > { %v1012_v24 = vsub.f32 %v934_v22, %v996_v18  ;;  %v1028_v25 = vmul.f32 %v1011_v19, %v1011_v19 }
 0x33c   : > { %v1031_v35 = vmul.f32 %v1014_v26, %v1014_v26 }
 0x33d   : > { %v1029_v27 = vmul.f32 %v1012_v24, %v1012_v24 }
 0x33f   : > { %v1044_v30 = vadd.f32 %v1029_v27, %v1028_v25  ;;  %v1395_v31 = vpop.f32.mrb[4].mxu1 }
 0x340   : > { %v947_v33 = vpop.f32.mrb[5].mxu1  ;;  %v1017_v41 = vsub.f32 %v1395_v31, %v1001_v32 }
 0x341   : > { %v1045_v36 = vadd.f32 %v1044_v30, %v1030_v29  ;;  %v1015_v37 = vsub.f32 %v947_v33, %v999_v28  ;;  %v1396_v38 = vpop.f32.mrb[6].mxu1 }
 0x342   : > { %v950_v40 = vpop.f32.mrb[7].mxu1  ;;  %v1018_v46 = vsub.f32 %v1396_v38, %v1002_v39  ;;  %v1034_v49 = vmul.f32 %v1017_v41, %v1017_v41 }
 0x343   : > { %v1032_v42 = vmul.f32 %v1015_v37, %v1015_v37  ;;  %v1046_v43 = vadd.f32 %v1045_v36, %v1031_v35  ;;  %v1016_v44 = vsub.f32 %v950_v40, %v1000_v34 }
 0x344   : > { %v1035_v55 = vmul.f32 %v1018_v46, %v1018_v46 }
 0x345   : > { %v1047_v45 = vadd.f32 %v1046_v43, %v1032_v42  ;;  %v1033_v47 = vmul.f32 %v1016_v44, %v1016_v44 }
 0x347   : > { %v1048_v50 = vadd.f32 %v1047_v45, %v1033_v47  ;;  %v1399_v51 = vpop.f32.mrb[8].mxu1 }
 0x348   : > { %v963_v53 = vpop.f32.mrb[9].mxu1  ;;  %v1021_v61 = vsub.f32 %v1399_v51, %v1005_v52 }
 0x349   : > { %v1049_v56 = vadd.f32 %v1048_v50, %v1034_v49  ;;  %v1019_v57 = vsub.f32 %v963_v53, %v1003_v48  ;;  %v1400_v58 = vpop.f32.mrb[10].mxu1 }
 0x34a   : > { %v966_v60 = vpop.f32.mrb[11].mxu1  ;;  %v1022_v2 = vsub.f32 %v1400_v58, %v1006_v59  ;;  %v1038_v5 = vmul.f32 %v1021_v61, %v1021_v61 }
 0x34b   : > { %v1036_v62 = vmul.f32 %v1019_v57, %v1019_v57  ;;  %v1050_v63 = vadd.f32 %v1049_v56, %v1035_v55  ;;  %v1020_v0 = vsub.f32 %v966_v60, %v1004_v54 }
 0x34c   : > { %v1039_v11 = vmul.f32 %v1022_v2, %v1022_v2 }
 0x34d   : > { %v1051_v1 = vadd.f32 %v1050_v63, %v1036_v62  ;;  %v1037_v3 = vmul.f32 %v1020_v0, %v1020_v0 }
 0x34f   : > { %v1052_v6 = vadd.f32 %v1051_v1, %v1037_v3  ;;  %v1403_v7 = vpop.f32.mrb[12].mxu1 }
 0x350   : > { %v979_v9 = vpop.f32.mrb[13].mxu1  ;;  %v1025_v17 = vsub.f32 %v1403_v7, %v1009_v8 }
 0x351   : > { %v1053_v12 = vadd.f32 %v1052_v6, %v1038_v5  ;;  %v1023_v13 = vsub.f32 %v979_v9, %v1007_v4  ;;  %v1404_v14 = vpop.f32.mrb[14].mxu1 }
 0x352   : > { %v982_v16 = vpop.f32.mrb[15].mxu1  ;;  %v1026_v22 = vsub.f32 %v1404_v14, %v1010_v15  ;;  %v1042_v24 = vmul.f32 %v1025_v17, %v1025_v17 }
 0x353   : > { %v1040_v18 = vmul.f32 %v1023_v13, %v1023_v13  ;;  %v1054_v19 = vadd.f32 %v1053_v12, %v1039_v11  ;;  %v1024_v20 = vsub.f32 %v982_v16, %v1008_v10 }
 0x354   : > { %v1043_v26 = vmul.f32 %v1026_v22, %v1026_v22 }
 0x355   : > { %v1055_v21 = vadd.f32 %v1054_v19, %v1040_v18  ;;  %v1041_v23 = vmul.f32 %v1024_v20, %v1024_v20 }
 0x357   : > { %v1056_v25 = vadd.f32 %v1055_v21, %v1041_v23 }
 0x359   : > { %v1057_v27 = vadd.f32 %v1056_v25, %v1042_v24 }
 0x35b   : > { %v1058_v28 = vadd.f32 %v1057_v27, %v1043_v26 }
 0x35d   : > { %1059 = vadd.xlane.f32.xlu0 %v1058_v28 }
 0x3ea   : > { %v1060_v29 = vpop.xlane.xlu0 %1059 }
 0x3eb   : > { %v1061_v30 = vrot.slane %v1060_v29, 4 }
 0x3ed   : > { %v1062_v31 = vadd.f32 %v1061_v30, %v1060_v29 }
 0x3ef   : > { %v1063_v32 = vrot.slane %v1062_v31, 2 }
 0x3f1   : > { %v1064_v33 = vadd.f32 %v1063_v32, %v1062_v31 }
 0x3f3   : > { %v1065_v34 = vrot.slane %v1064_v33, 1 }
 0x3f5   : > { %v1066_v35 = vadd.f32 %v1065_v34, %v1064_v33 }
 0x3f7   : > { %1421 = vpush %v1066_v35 }
 0x428   : > { %s1422_s21 = spop %1421 }
 0x429   : > { %s1068_s23 = sadd.f32 %s1422_s21, %s1027_s17 }
 0x42b   : > { %1070 = sst [smem:[#allocation6]] %s1068_s23 }
 0x42c   : > { %1424 = sst [smem:[#allocation9]] (%p1429_p0), %s1068_s23 }
 0x42d   : > { %1514 = shalt.err (!%p1511_p5)
}
 0x42e   : > { %s1559_s30 = smov [#allocation9]  }
 0x42f   : > { %1426 = dma.smem_to_hbm (%p1429_p0), %s1559_s30, 16, %s1793_s8, [#allocation10]  }
 0x430   : > { %1538 = dma.done.wait (%p1429_p0), [#allocation10], 16  }
 0x431   : > { %1540 = vsyncadd (%p1429_p0), [#allocation10], 4294967280 }
 0x432   : > { %1091 = sfence }
 0x433 PF: > { %s25_s10 = sadd.s32 1, %s1543_s10  }
 0x434   : > { %p22_p6 = scmp.ge.s32.totalorder %s25_s10, 4  }
 0x436   :  { %24 = sbr.rel (!%p22_p6) target bundleno = 16 (0x10), region = 311 }
 0x43d   :  { %1097 = vsyncpa [#allocation10], 1 }
 0x43e   :  { %1099 = vsyncpa [#allocation10 + $0x1], 1 }
 0x43f   :  { %1100 = vsyncmov [#allocation5] }
 0x442   :  { %s1101_s12 = vpop.sfrf %1100 }
 0x443   :  { %p1255_p7 = scmp.ne.s32.totalorder %s1101_s12, 0 }
 0x445   :  { %1105 = shalt.err (%p1255_p7)  }
 0x446   :  { %1107 = vsyncmov [#allocation5 + $0x1] }
 0x449   :  { %s1108_s13 = vpop.sfrf %1107 }
 0x44a   :  { %p1256_p8 = scmp.ne.s32.totalorder %s1108_s13, 0 }
 0x44c   :  { %1112 = shalt.err (%p1256_p8)  }
 0x44d   :  { %1114 = vsyncmov [#allocation5 + $0x2] }
 0x450   :  { %s1115_s0 = vpop.sfrf %1114 }
 0x451   :  { %p1257_p9 = scmp.ne.s32.totalorder %s1115_s0, 0 }
 0x453   :  { %1119 = shalt.err (%p1257_p9)  }
 0x454   :  { %1121 = vsyncmov [#allocation5 + $0x3] }
 0x457   :  { %s1122_s14 = vpop.sfrf %1121 }
 0x458   :  { %p1258_p10 = scmp.ne.s32.totalorder %s1122_s14, 0 }
 0x45a   :  { %1126 = shalt.err (%p1258_p10)  }

</bundles_post_ra>
